<compile_context>
chip_gen: v6e
topology: v6e:2x2x1
jax: 0.10.0
libtpu: 0.0.40
codegen_flags: <defaults>
</compile_context>

<pallas_src>
import functools

import jax
import jax.numpy as jnp
import numpy as np
from jax import lax
from jax.experimental import pallas as pl
from jax.experimental.pallas import tpu as pltpu

_LANES = 128  # natural fit for v5e MXU; set lanes=256 on v6e/v7x if desired.


def _wsece_kernel(tri_ref, conf_ref, hits_ref, labels_ref, out_ref, *, n_bins):
    """One grid step == one block of classes.  Sample data blocks are resident."""
    rows = conf_ref.shape[0]
    class_block = out_ref.shape[-1]
    base_c = pl.program_id(0) * class_block

    tri = tri_ref[...]          # (L, L) bf16, strictly upper triangular (0/1)
    conf = conf_ref[...]        # (rows, L) f32
    hits = hits_ref[...]        # (rows, L) f32
    labels = labels_ref[...]    # (rows, L) i32 (padding = -1, never matches)
    diff = conf - hits          # class independent -> hoisted out of class loop

    row_iota = lax.broadcasted_iota(jnp.int32, (rows, 1), 0)
    class_iota = lax.broadcasted_iota(jnp.int32, (1, class_block), 1)
    zero11 = jnp.zeros((1, 1), jnp.float32)
    nb = float(n_bins)

    def class_body(j, res):
        c = base_c + j
        mask = labels == c                                   # (rows, L)
        mask_f = mask.astype(jnp.float32)

        # ---- exclusive in-class rank (original order) ----------------------
        # within-row (lane) prefix: one (rows,L) x (L,L) bf16 matmul, f32 acc.
        rank_in_row = jnp.dot(mask.astype(jnp.bfloat16), tri,
                              preferred_element_type=jnp.float32)  # (rows, L)
        # cross-row offsets: exclusive cumsum of per-row totals via log-depth
        # roll+add scan over sublanes (no (rows,rows) operand anywhere).
        row_tot = jnp.sum(mask_f, axis=1, keepdims=True)           # (rows, 1)
        inc = row_tot
        d = 1
        while d < rows:
            shifted = pltpu.roll(inc, d, 0)          # shifted[r] = inc[r - d]
            inc = inc + jnp.where(row_iota >= d, shifted, 0.0)
            d *= 2
        rank_f = rank_in_row + (inc - row_tot)       # exact for counts < 2**24

        # ---- equal-mass binning via prefix sums ----------------------------
        count_f = jnp.sum(row_tot, axis=0, keepdims=True)          # (1, 1)
        # mass = floor(count / n_bins) in f32, with guards making the floor
        # exact regardless of division rounding (counts < 2**24).
        q = jnp.floor(count_f / nb)
        q = q + jnp.where((q + 1.0) * nb <= count_f, 1.0, 0.0)
        mass_f = q - jnp.where(q * nb > count_f, 1.0, 0.0)

        masked_diff = jnp.where(mask, diff, 0.0)

        # S_k = sum(diff over members with rank < k*mass); d_b = S_{b+1} - S_b.
        def bin_body(_, carry):
            thr, prev_s, acc = carry
            part = jnp.sum(jnp.where(rank_f < thr, masked_diff, 0.0),
                           axis=1, keepdims=True)                  # (rows, 1)
            s_k = jnp.sum(part, axis=0, keepdims=True)             # (1, 1)
            acc = acc + jnp.abs(s_k - prev_s)
            return (thr + mass_f, s_k, acc)

        _, _, abs_sum = lax.fori_loop(0, n_bins, bin_body,
                                      (mass_f, zero11, zero11), unroll=True)

        # per-class numerator: ece_c * count_c.  mass == 0 -> 0/0 -> NaN, which
        # matches the torch/numpy reference (mean of an empty slice).
        numer = abs_sum * count_f / (mass_f * nb)                   # (1, 1)
        return res + jnp.where(class_iota == j, numer, 0.0)

    res = lax.fori_loop(0, class_block, class_body,
                        jnp.zeros((1, class_block), jnp.float32))
    out_ref[...] = res[jnp.newaxis]                 # (1, 1, class_block)


def wsece_pallas(confidences, hits, labels, *, num_class, n_bins=15,
                 class_block=None, lanes=_LANES):
    n = confidences.shape[0]
    assert n < (1 << 24), "f32 rank arithmetic requires counts < 2**24"

    # Pad samples to a multiple of 8*lanes so rows is a multiple of 8 (full
    # (8,128) vreg occupancy).  Padding uses label -1 (valid labels are >= 0).
    tile = 8 * lanes
    np_pad = ((n + tile - 1) // tile) * tile
    pad = np_pad - n
    rows = np_pad // lanes

    conf = jnp.pad(confidences.astype(jnp.float32), (0, pad)).reshape(rows, lanes)
    hit = jnp.pad(hits.astype(jnp.float32), (0, pad)).reshape(rows, lanes)
    lab = jnp.pad(labels.astype(jnp.int32), (0, pad),
                  constant_values=-1).reshape(rows, lanes)

    # Constant strictly-upper-triangular matrix for the within-row prefix,
    # built once in the wrapper.  0/1 values are exact in bf16; acc is f32.
    i = np.arange(lanes)
    tri_lane = jnp.asarray((i[:, None] < i[None, :]).astype(np.float32),
                           dtype=jnp.bfloat16)

    # Block classes per grid step (amortize ~0.35us/step + lane-dense output),
    # keeping >= 2 grid steps so the "parallel" axis can use both v7x cores.
    if class_block is None:
        class_block = max(1, (num_class + 1) // 2)
    grid_steps = (num_class + class_block - 1) // class_block

    # Explicit VMEM budget (v5e default scoped limit is only 16 MiB).
    need = 2 * (3 * rows * lanes * 4 + lanes * lanes * 2) + (1 << 20)
    vmem_limit = int(min(128 * 2**20, max(32 * 2**20, need)))

    out = pl.pallas_call(
        functools.partial(_wsece_kernel, n_bins=n_bins),
        out_shape=jax.ShapeDtypeStruct((grid_steps, 1, class_block), jnp.float32),
        grid=(grid_steps,),
        in_specs=[
            pl.BlockSpec((lanes, lanes), lambda g: (0, 0)),   # tri_lane
            pl.BlockSpec((rows, lanes), lambda g: (0, 0)),    # conf
            pl.BlockSpec((rows, lanes), lambda g: (0, 0)),    # hits
            pl.BlockSpec((rows, lanes), lambda g: (0, 0)),    # labels
        ],
        out_specs=pl.BlockSpec((1, 1, class_block), lambda g: (g, 0, 0)),
        compiler_params=pltpu.CompilerParams(
            dimension_semantics=("parallel",),
            vmem_limit_bytes=vmem_limit),
    )(tri_lane, conf, hit, lab)

    # cece = sum_c (ece_c * count_c) / N.  Padded class slots (index >=
    # num_class) are dropped before the sum so their 0/0 NaNs never propagate.
    return jnp.sum(out.reshape(-1)[:num_class]) / jnp.float32(n)


def wsece_reference(confidences, hits, labels, *, num_class, n_bins=15):
    """NumPy port of the PyTorch forward (source of truth)."""
    cece_numerator = 0.0
    for c in range(num_class):
        index = labels == c
        class_confidences = confidences[index]
        class_hits = hits[index]
        mass_in_bin = len(class_confidences) // n_bins
        ece = 0.0
        for b in range(n_bins):
            ps = class_confidences[b * mass_in_bin:(b + 1) * mass_in_bin].mean()
            acc_in_bin = class_hits[b * mass_in_bin:(b + 1) * mass_in_bin].mean()
            ece += np.abs(ps - acc_in_bin) / n_bins
        cece_numerator = cece_numerator + ece * len(class_confidences)
    return cece_numerator / len(confidences)


if __name__ == "__main__":
    NUM_CLASS = 4
    N_BINS = 15
    N = 256

    key = jax.random.PRNGKey(0)
    k_conf, k_hit, k_lab = jax.random.split(key, 3)
    confidences = jax.random.uniform(k_conf, (N,), dtype=jnp.float32)
    hits = (jax.random.uniform(k_hit, (N,)) > 0.5).astype(jnp.float32)
    labels = jax.random.randint(k_lab, (N,), 0, NUM_CLASS, dtype=jnp.int32)

    result = wsece_pallas(confidences, hits, labels,
                          num_class=NUM_CLASS, n_bins=N_BINS)
    result = jax.block_until_ready(result)

    ref = wsece_reference(np.asarray(confidences), np.asarray(hits),
                          np.asarray(labels), num_class=NUM_CLASS,
                          n_bins=N_BINS)

    np.testing.assert_allclose(float(result), float(ref), rtol=1e-5, atol=1e-5)
    print("KERNEL_OK")
</pallas_src>

<mosaic_0001>
module attributes {stable_mosaic.version = 11 : i64} {
  func.func @_wsece_kernel(%arg0: i32, %arg1: memref<128x128xbf16, #tpu.memory_space<vmem>>, %arg2: memref<8x128xf32, #tpu.memory_space<vmem>>, %arg3: memref<8x128xf32, #tpu.memory_space<vmem>>, %arg4: memref<8x128xi32, #tpu.memory_space<vmem>>, %arg5: memref<1x1x2xf32, #tpu.memory_space<vmem>>) attributes {dimension_semantics = [#tpu.dimension_semantics<parallel>], iteration_bounds = array<i64: 2>, scalar_prefetch = 0 : i64, scratch_operands = 0 : i64, tpu.core_type = #tpu.core_type<tc>, window_params = [{pipeline_mode = #tpu.pipeline_mode<synchronous>, transform_indices = @transform_0, window_bounds = array<i64: 128, 128>}, {pipeline_mode = #tpu.pipeline_mode<synchronous>, transform_indices = @transform_1, window_bounds = array<i64: 8, 128>}, {pipeline_mode = #tpu.pipeline_mode<synchronous>, transform_indices = @transform_2, window_bounds = array<i64: 8, 128>}, {pipeline_mode = #tpu.pipeline_mode<synchronous>, transform_indices = @transform_3, window_bounds = array<i64: 8, 128>}, {transform_indices = @transform_4, window_bounds = array<i64: 1, 1, 2>}]} {
    %c2_i32 = arith.constant 2 : i32
    %0 = arith.muli %arg0, %c2_i32 : i32
    %c0 = arith.constant 0 : index
    %c0_0 = arith.constant 0 : index
    %1 = vector.load %arg1[%c0, %c0_0] : memref<128x128xbf16, #tpu.memory_space<vmem>>, vector<128x128xbf16>
    %c0_1 = arith.constant 0 : index
    %c0_2 = arith.constant 0 : index
    %2 = vector.load %arg2[%c0_1, %c0_2] : memref<8x128xf32, #tpu.memory_space<vmem>>, vector<8x128xf32>
    %c0_3 = arith.constant 0 : index
    %c0_4 = arith.constant 0 : index
    %3 = vector.load %arg3[%c0_3, %c0_4] : memref<8x128xf32, #tpu.memory_space<vmem>>, vector<8x128xf32>
    %c0_5 = arith.constant 0 : index
    %c0_6 = arith.constant 0 : index
    %4 = vector.load %arg4[%c0_5, %c0_6] : memref<8x128xi32, #tpu.memory_space<vmem>>, vector<8x128xi32>
    %5 = arith.subf %2, %3 : vector<8x128xf32>
    %6 = tpu.iota {dimensions = array<i32: 0>} : vector<8x1xi32>
    %7 = tpu.iota {dimensions = array<i32: 1>} : vector<1x2xi32>
    %cst = arith.constant 0.000000e+00 : f32
    %8 = vector.broadcast %cst : f32 to vector<1x1xf32>
    %cst_7 = arith.constant 0.000000e+00 : f32
    %9 = vector.broadcast %cst_7 : f32 to vector<1x2xf32>
    %c0_i32 = arith.constant 0 : i32
    %c2_i32_8 = arith.constant 2 : i32
    %10 = arith.addi %c0_i32, %c2_i32_8 : i32
    %c1_i32 = arith.constant 1 : i32
    %11 = scf.for %arg6 = %c0_i32 to %10 step %c1_i32 iter_args(%arg7 = %9) -> (vector<1x2xf32>)  : i32 {
      %14 = arith.addi %0, %arg6 : i32
      %15 = vector.broadcast %14 : i32 to vector<8x128xi32>
      %16 = arith.cmpi eq, %4, %15 : vector<8x128xi32>
      %17 = arith.extui %16 : vector<8x128xi1> to vector<8x128xi32>
      %18 = arith.sitofp %17 : vector<8x128xi32> to vector<8x128xf32>
      %19 = arith.extui %16 : vector<8x128xi1> to vector<8x128xi32>
      %20 = arith.sitofp %19 : vector<8x128xi32> to vector<8x128xf32>
      %21 = arith.truncf %20 : vector<8x128xf32> to vector<8x128xbf16>
      %cst_13 = arith.constant dense<0.000000e+00> : vector<8x128xf32>
      %22 = tpu.matmul %21, %1, %cst_13 {dimension_numbers = #tpu.dot_dimension_numbers<[1], [0], [0], [1], [0, 0, 1, 1], [], []>} : vector<8x128xbf16>, vector<128x128xbf16>, vector<8x128xf32> -> vector<8x128xf32>
      %cst_14 = arith.constant dense<0.000000e+00> : vector<8xf32>
      %23 = vector.multi_reduction <add>, %18, %cst_14 [1] : vector<8x128xf32> to vector<8xf32>
      %24 = vector.shape_cast %23 : vector<8xf32> to vector<8x1xf32>
      %c1_i32_15 = arith.constant 1 : i32
      %25 = tpu.dynamic_rotate %24 by %c1_i32_15 dim 0 : vector<8x1xf32>, i32 -> vector<8x1xf32>
      %c1_i32_16 = arith.constant 1 : i32
      %26 = vector.broadcast %c1_i32_16 : i32 to vector<8x1xi32>
      %27 = arith.cmpi sge, %6, %26 : vector<8x1xi32>
      %cst_17 = arith.constant 0.000000e+00 : f32
      %28 = vector.broadcast %cst_17 : f32 to vector<8x1xf32>
      %29 = arith.select %27, %25, %28 : vector<8x1xi1>, vector<8x1xf32>
      %30 = arith.addf %24, %29 : vector<8x1xf32>
      %c2_i32_18 = arith.constant 2 : i32
      %31 = tpu.dynamic_rotate %30 by %c2_i32_18 dim 0 : vector<8x1xf32>, i32 -> vector<8x1xf32>
      %c2_i32_19 = arith.constant 2 : i32
      %32 = vector.broadcast %c2_i32_19 : i32 to vector<8x1xi32>
      %33 = arith.cmpi sge, %6, %32 : vector<8x1xi32>
      %cst_20 = arith.constant 0.000000e+00 : f32
      %34 = vector.broadcast %cst_20 : f32 to vector<8x1xf32>
      %35 = arith.select %33, %31, %34 : vector<8x1xi1>, vector<8x1xf32>
      %36 = arith.addf %30, %35 : vector<8x1xf32>
      %c4_i32 = arith.constant 4 : i32
      %37 = tpu.dynamic_rotate %36 by %c4_i32 dim 0 : vector<8x1xf32>, i32 -> vector<8x1xf32>
      %c4_i32_21 = arith.constant 4 : i32
      %38 = vector.broadcast %c4_i32_21 : i32 to vector<8x1xi32>
      %39 = arith.cmpi sge, %6, %38 : vector<8x1xi32>
      %cst_22 = arith.constant 0.000000e+00 : f32
      %40 = vector.broadcast %cst_22 : f32 to vector<8x1xf32>
      %41 = arith.select %39, %37, %40 : vector<8x1xi1>, vector<8x1xf32>
      %42 = arith.addf %36, %41 : vector<8x1xf32>
      %43 = arith.subf %42, %24 : vector<8x1xf32>
      %44 = vector.broadcast %43 : vector<8x1xf32> to vector<8x128xf32>
      %45 = arith.addf %22, %44 : vector<8x128xf32>
      %cst_23 = arith.constant dense<0.000000e+00> : vector<1xf32>
      %46 = vector.multi_reduction <add>, %24, %cst_23 [0] : vector<8x1xf32> to vector<1xf32>
      %47 = vector.shape_cast %46 : vector<1xf32> to vector<1x1xf32>
      %cst_24 = arith.constant 1.500000e+01 : f32
      %48 = vector.broadcast %cst_24 : f32 to vector<1x1xf32>
      %49 = arith.divf %47, %48 : vector<1x1xf32>
      %50 = math.floor %49 : vector<1x1xf32>
      %cst_25 = arith.constant 1.000000e+00 : f32
      %51 = vector.broadcast %cst_25 : f32 to vector<1x1xf32>
      %52 = arith.addf %50, %51 : vector<1x1xf32>
      %cst_26 = arith.constant 1.500000e+01 : f32
      %53 = vector.broadcast %cst_26 : f32 to vector<1x1xf32>
      %54 = arith.mulf %52, %53 : vector<1x1xf32>
      %55 = arith.cmpf ole, %54, %47 : vector<1x1xf32>
      %cst_27 = arith.constant 1.000000e+00 : f32
      %cst_28 = arith.constant 0.000000e+00 : f32
      %56 = vector.broadcast %cst_27 : f32 to vector<1x1xf32>
      %57 = vector.broadcast %cst_28 : f32 to vector<1x1xf32>
      %58 = arith.select %55, %56, %57 : vector<1x1xi1>, vector<1x1xf32>
      %59 = arith.addf %50, %58 : vector<1x1xf32>
      %cst_29 = arith.constant 1.500000e+01 : f32
      %60 = vector.broadcast %cst_29 : f32 to vector<1x1xf32>
      %61 = arith.mulf %59, %60 : vector<1x1xf32>
      %62 = arith.cmpf ogt, %61, %47 : vector<1x1xf32>
      %cst_30 = arith.constant 1.000000e+00 : f32
      %cst_31 = arith.constant 0.000000e+00 : f32
      %63 = vector.broadcast %cst_30 : f32 to vector<1x1xf32>
      %64 = vector.broadcast %cst_31 : f32 to vector<1x1xf32>
      %65 = arith.select %62, %63, %64 : vector<1x1xi1>, vector<1x1xf32>
      %66 = arith.subf %59, %65 : vector<1x1xf32>
      %cst_32 = arith.constant 0.000000e+00 : f32
      %67 = vector.broadcast %cst_32 : f32 to vector<8x128xf32>
      %68 = arith.select %16, %5, %67 : vector<8x128xi1>, vector<8x128xf32>
      %c0_i32_33 = arith.constant 0 : i32
      %69 = vector.broadcast %66 : vector<1x1xf32> to vector<8x128xf32>
      %70 = arith.cmpf olt, %45, %69 : vector<8x128xf32>
      %cst_34 = arith.constant 0.000000e+00 : f32
      %71 = vector.broadcast %cst_34 : f32 to vector<8x128xf32>
      %72 = arith.select %70, %68, %71 : vector<8x128xi1>, vector<8x128xf32>
      %cst_35 = arith.constant dense<0.000000e+00> : vector<8xf32>
      %73 = vector.multi_reduction <add>, %72, %cst_35 [1] : vector<8x128xf32> to vector<8xf32>
      %74 = vector.shape_cast %73 : vector<8xf32> to vector<8x1xf32>
      %cst_36 = arith.constant dense<0.000000e+00> : vector<1xf32>
      %75 = vector.multi_reduction <add>, %74, %cst_36 [0] : vector<8x1xf32> to vector<1xf32>
      %76 = vector.shape_cast %75 : vector<1xf32> to vector<1x1xf32>
      %77 = arith.subf %76, %8 : vector<1x1xf32>
      %78 = math.absf %77 : vector<1x1xf32>
      %79 = arith.addf %8, %78 : vector<1x1xf32>
      %80 = arith.addf %66, %66 : vector<1x1xf32>
      %c1_i32_37 = arith.constant 1 : i32
      %81 = vector.broadcast %80 : vector<1x1xf32> to vector<8x128xf32>
      %82 = arith.cmpf olt, %45, %81 : vector<8x128xf32>
      %cst_38 = arith.constant 0.000000e+00 : f32
      %83 = vector.broadcast %cst_38 : f32 to vector<8x128xf32>
      %84 = arith.select %82, %68, %83 : vector<8x128xi1>, vector<8x128xf32>
      %cst_39 = arith.constant dense<0.000000e+00> : vector<8xf32>
      %85 = vector.multi_reduction <add>, %84, %cst_39 [1] : vector<8x128xf32> to vector<8xf32>
      %86 = vector.shape_cast %85 : vector<8xf32> to vector<8x1xf32>
      %cst_40 = arith.constant dense<0.000000e+00> : vector<1xf32>
      %87 = vector.multi_reduction <add>, %86, %cst_40 [0] : vector<8x1xf32> to vector<1xf32>
      %88 = vector.shape_cast %87 : vector<1xf32> to vector<1x1xf32>
      %89 = arith.subf %88, %76 : vector<1x1xf32>
      %90 = math.absf %89 : vector<1x1xf32>
      %91 = arith.addf %79, %90 : vector<1x1xf32>
      %92 = arith.addf %80, %66 : vector<1x1xf32>
      %c2_i32_41 = arith.constant 2 : i32
      %93 = vector.broadcast %92 : vector<1x1xf32> to vector<8x128xf32>
      %94 = arith.cmpf olt, %45, %93 : vector<8x128xf32>
      %cst_42 = arith.constant 0.000000e+00 : f32
      %95 = vector.broadcast %cst_42 : f32 to vector<8x128xf32>
      %96 = arith.select %94, %68, %95 : vector<8x128xi1>, vector<8x128xf32>
      %cst_43 = arith.constant dense<0.000000e+00> : vector<8xf32>
      %97 = vector.multi_reduction <add>, %96, %cst_43 [1] : vector<8x128xf32> to vector<8xf32>
      %98 = vector.shape_cast %97 : vector<8xf32> to vector<8x1xf32>
      %cst_44 = arith.constant dense<0.000000e+00> : vector<1xf32>
      %99 = vector.multi_reduction <add>, %98, %cst_44 [0] : vector<8x1xf32> to vector<1xf32>
      %100 = vector.shape_cast %99 : vector<1xf32> to vector<1x1xf32>
      %101 = arith.subf %100, %88 : vector<1x1xf32>
      %102 = math.absf %101 : vector<1x1xf32>
      %103 = arith.addf %91, %102 : vector<1x1xf32>
      %104 = arith.addf %92, %66 : vector<1x1xf32>
      %c3_i32 = arith.constant 3 : i32
      %105 = vector.broadcast %104 : vector<1x1xf32> to vector<8x128xf32>
      %106 = arith.cmpf olt, %45, %105 : vector<8x128xf32>
      %cst_45 = arith.constant 0.000000e+00 : f32
      %107 = vector.broadcast %cst_45 : f32 to vector<8x128xf32>
      %108 = arith.select %106, %68, %107 : vector<8x128xi1>, vector<8x128xf32>
      %cst_46 = arith.constant dense<0.000000e+00> : vector<8xf32>
      %109 = vector.multi_reduction <add>, %108, %cst_46 [1] : vector<8x128xf32> to vector<8xf32>
      %110 = vector.shape_cast %109 : vector<8xf32> to vector<8x1xf32>
      %cst_47 = arith.constant dense<0.000000e+00> : vector<1xf32>
      %111 = vector.multi_reduction <add>, %110, %cst_47 [0] : vector<8x1xf32> to vector<1xf32>
      %112 = vector.shape_cast %111 : vector<1xf32> to vector<1x1xf32>
      %113 = arith.subf %112, %100 : vector<1x1xf32>
      %114 = math.absf %113 : vector<1x1xf32>
      %115 = arith.addf %103, %114 : vector<1x1xf32>
      %116 = arith.addf %104, %66 : vector<1x1xf32>
      %c4_i32_48 = arith.constant 4 : i32
      %117 = vector.broadcast %116 : vector<1x1xf32> to vector<8x128xf32>
      %118 = arith.cmpf olt, %45, %117 : vector<8x128xf32>
      %cst_49 = arith.constant 0.000000e+00 : f32
      %119 = vector.broadcast %cst_49 : f32 to vector<8x128xf32>
      %120 = arith.select %118, %68, %119 : vector<8x128xi1>, vector<8x128xf32>
      %cst_50 = arith.constant dense<0.000000e+00> : vector<8xf32>
      %121 = vector.multi_reduction <add>, %120, %cst_50 [1] : vector<8x128xf32> to vector<8xf32>
      %122 = vector.shape_cast %121 : vector<8xf32> to vector<8x1xf32>
      %cst_51 = arith.constant dense<0.000000e+00> : vector<1xf32>
      %123 = vector.multi_reduction <add>, %122, %cst_51 [0] : vector<8x1xf32> to vector<1xf32>
      %124 = vector.shape_cast %123 : vector<1xf32> to vector<1x1xf32>
      %125 = arith.subf %124, %112 : vector<1x1xf32>
      %126 = math.absf %125 : vector<1x1xf32>
      %127 = arith.addf %115, %126 : vector<1x1xf32>
      %128 = arith.addf %116, %66 : vector<1x1xf32>
      %c5_i32 = arith.constant 5 : i32
      %129 = vector.broadcast %128 : vector<1x1xf32> to vector<8x128xf32>
      %130 = arith.cmpf olt, %45, %129 : vector<8x128xf32>
      %cst_52 = arith.constant 0.000000e+00 : f32
      %131 = vector.broadcast %cst_52 : f32 to vector<8x128xf32>
      %132 = arith.select %130, %68, %131 : vector<8x128xi1>, vector<8x128xf32>
      %cst_53 = arith.constant dense<0.000000e+00> : vector<8xf32>
      %133 = vector.multi_reduction <add>, %132, %cst_53 [1] : vector<8x128xf32> to vector<8xf32>
      %134 = vector.shape_cast %133 : vector<8xf32> to vector<8x1xf32>
      %cst_54 = arith.constant dense<0.000000e+00> : vector<1xf32>
      %135 = vector.multi_reduction <add>, %134, %cst_54 [0] : vector<8x1xf32> to vector<1xf32>
      %136 = vector.shape_cast %135 : vector<1xf32> to vector<1x1xf32>
      %137 = arith.subf %136, %124 : vector<1x1xf32>
      %138 = math.absf %137 : vector<1x1xf32>
      %139 = arith.addf %127, %138 : vector<1x1xf32>
      %140 = arith.addf %128, %66 : vector<1x1xf32>
      %c6_i32 = arith.constant 6 : i32
      %141 = vector.broadcast %140 : vector<1x1xf32> to vector<8x128xf32>
      %142 = arith.cmpf olt, %45, %141 : vector<8x128xf32>
      %cst_55 = arith.constant 0.000000e+00 : f32
      %143 = vector.broadcast %cst_55 : f32 to vector<8x128xf32>
      %144 = arith.select %142, %68, %143 : vector<8x128xi1>, vector<8x128xf32>
      %cst_56 = arith.constant dense<0.000000e+00> : vector<8xf32>
      %145 = vector.multi_reduction <add>, %144, %cst_56 [1] : vector<8x128xf32> to vector<8xf32>
      %146 = vector.shape_cast %145 : vector<8xf32> to vector<8x1xf32>
      %cst_57 = arith.constant dense<0.000000e+00> : vector<1xf32>
      %147 = vector.multi_reduction <add>, %146, %cst_57 [0] : vector<8x1xf32> to vector<1xf32>
      %148 = vector.shape_cast %147 : vector<1xf32> to vector<1x1xf32>
      %149 = arith.subf %148, %136 : vector<1x1xf32>
      %150 = math.absf %149 : vector<1x1xf32>
      %151 = arith.addf %139, %150 : vector<1x1xf32>
      %152 = arith.addf %140, %66 : vector<1x1xf32>
      %c7_i32 = arith.constant 7 : i32
      %153 = vector.broadcast %152 : vector<1x1xf32> to vector<8x128xf32>
      %154 = arith.cmpf olt, %45, %153 : vector<8x128xf32>
      %cst_58 = arith.constant 0.000000e+00 : f32
      %155 = vector.broadcast %cst_58 : f32 to vector<8x128xf32>
      %156 = arith.select %154, %68, %155 : vector<8x128xi1>, vector<8x128xf32>
      %cst_59 = arith.constant dense<0.000000e+00> : vector<8xf32>
      %157 = vector.multi_reduction <add>, %156, %cst_59 [1] : vector<8x128xf32> to vector<8xf32>
      %158 = vector.shape_cast %157 : vector<8xf32> to vector<8x1xf32>
      %cst_60 = arith.constant dense<0.000000e+00> : vector<1xf32>
      %159 = vector.multi_reduction <add>, %158, %cst_60 [0] : vector<8x1xf32> to vector<1xf32>
      %160 = vector.shape_cast %159 : vector<1xf32> to vector<1x1xf32>
      %161 = arith.subf %160, %148 : vector<1x1xf32>
      %162 = math.absf %161 : vector<1x1xf32>
      %163 = arith.addf %151, %162 : vector<1x1xf32>
      %164 = arith.addf %152, %66 : vector<1x1xf32>
      %c8_i32 = arith.constant 8 : i32
      %165 = vector.broadcast %164 : vector<1x1xf32> to vector<8x128xf32>
      %166 = arith.cmpf olt, %45, %165 : vector<8x128xf32>
      %cst_61 = arith.constant 0.000000e+00 : f32
      %167 = vector.broadcast %cst_61 : f32 to vector<8x128xf32>
      %168 = arith.select %166, %68, %167 : vector<8x128xi1>, vector<8x128xf32>
      %cst_62 = arith.constant dense<0.000000e+00> : vector<8xf32>
      %169 = vector.multi_reduction <add>, %168, %cst_62 [1] : vector<8x128xf32> to vector<8xf32>
      %170 = vector.shape_cast %169 : vector<8xf32> to vector<8x1xf32>
      %cst_63 = arith.constant dense<0.000000e+00> : vector<1xf32>
      %171 = vector.multi_reduction <add>, %170, %cst_63 [0] : vector<8x1xf32> to vector<1xf32>
      %172 = vector.shape_cast %171 : vector<1xf32> to vector<1x1xf32>
      %173 = arith.subf %172, %160 : vector<1x1xf32>
      %174 = math.absf %173 : vector<1x1xf32>
      %175 = arith.addf %163, %174 : vector<1x1xf32>
      %176 = arith.addf %164, %66 : vector<1x1xf32>
      %c9_i32 = arith.constant 9 : i32
      %177 = vector.broadcast %176 : vector<1x1xf32> to vector<8x128xf32>
      %178 = arith.cmpf olt, %45, %177 : vector<8x128xf32>
      %cst_64 = arith.constant 0.000000e+00 : f32
      %179 = vector.broadcast %cst_64 : f32 to vector<8x128xf32>
      %180 = arith.select %178, %68, %179 : vector<8x128xi1>, vector<8x128xf32>
      %cst_65 = arith.constant dense<0.000000e+00> : vector<8xf32>
      %181 = vector.multi_reduction <add>, %180, %cst_65 [1] : vector<8x128xf32> to vector<8xf32>
      %182 = vector.shape_cast %181 : vector<8xf32> to vector<8x1xf32>
      %cst_66 = arith.constant dense<0.000000e+00> : vector<1xf32>
      %183 = vector.multi_reduction <add>, %182, %cst_66 [0] : vector<8x1xf32> to vector<1xf32>
      %184 = vector.shape_cast %183 : vector<1xf32> to vector<1x1xf32>
      %185 = arith.subf %184, %172 : vector<1x1xf32>
      %186 = math.absf %185 : vector<1x1xf32>
      %187 = arith.addf %175, %186 : vector<1x1xf32>
      %188 = arith.addf %176, %66 : vector<1x1xf32>
      %c10_i32 = arith.constant 10 : i32
      %189 = vector.broadcast %188 : vector<1x1xf32> to vector<8x128xf32>
      %190 = arith.cmpf olt, %45, %189 : vector<8x128xf32>
      %cst_67 = arith.constant 0.000000e+00 : f32
      %191 = vector.broadcast %cst_67 : f32 to vector<8x128xf32>
      %192 = arith.select %190, %68, %191 : vector<8x128xi1>, vector<8x128xf32>
      %cst_68 = arith.constant dense<0.000000e+00> : vector<8xf32>
      %193 = vector.multi_reduction <add>, %192, %cst_68 [1] : vector<8x128xf32> to vector<8xf32>
      %194 = vector.shape_cast %193 : vector<8xf32> to vector<8x1xf32>
      %cst_69 = arith.constant dense<0.000000e+00> : vector<1xf32>
      %195 = vector.multi_reduction <add>, %194, %cst_69 [0] : vector<8x1xf32> to vector<1xf32>
      %196 = vector.shape_cast %195 : vector<1xf32> to vector<1x1xf32>
      %197 = arith.subf %196, %184 : vector<1x1xf32>
      %198 = math.absf %197 : vector<1x1xf32>
      %199 = arith.addf %187, %198 : vector<1x1xf32>
      %200 = arith.addf %188, %66 : vector<1x1xf32>
      %c11_i32 = arith.constant 11 : i32
      %201 = vector.broadcast %200 : vector<1x1xf32> to vector<8x128xf32>
      %202 = arith.cmpf olt, %45, %201 : vector<8x128xf32>
      %cst_70 = arith.constant 0.000000e+00 : f32
      %203 = vector.broadcast %cst_70 : f32 to vector<8x128xf32>
      %204 = arith.select %202, %68, %203 : vector<8x128xi1>, vector<8x128xf32>
      %cst_71 = arith.constant dense<0.000000e+00> : vector<8xf32>
      %205 = vector.multi_reduction <add>, %204, %cst_71 [1] : vector<8x128xf32> to vector<8xf32>
      %206 = vector.shape_cast %205 : vector<8xf32> to vector<8x1xf32>
      %cst_72 = arith.constant dense<0.000000e+00> : vector<1xf32>
      %207 = vector.multi_reduction <add>, %206, %cst_72 [0] : vector<8x1xf32> to vector<1xf32>
      %208 = vector.shape_cast %207 : vector<1xf32> to vector<1x1xf32>
      %209 = arith.subf %208, %196 : vector<1x1xf32>
      %210 = math.absf %209 : vector<1x1xf32>
      %211 = arith.addf %199, %210 : vector<1x1xf32>
      %212 = arith.addf %200, %66 : vector<1x1xf32>
      %c12_i32 = arith.constant 12 : i32
      %213 = vector.broadcast %212 : vector<1x1xf32> to vector<8x128xf32>
      %214 = arith.cmpf olt, %45, %213 : vector<8x128xf32>
      %cst_73 = arith.constant 0.000000e+00 : f32
      %215 = vector.broadcast %cst_73 : f32 to vector<8x128xf32>
      %216 = arith.select %214, %68, %215 : vector<8x128xi1>, vector<8x128xf32>
      %cst_74 = arith.constant dense<0.000000e+00> : vector<8xf32>
      %217 = vector.multi_reduction <add>, %216, %cst_74 [1] : vector<8x128xf32> to vector<8xf32>
      %218 = vector.shape_cast %217 : vector<8xf32> to vector<8x1xf32>
      %cst_75 = arith.constant dense<0.000000e+00> : vector<1xf32>
      %219 = vector.multi_reduction <add>, %218, %cst_75 [0] : vector<8x1xf32> to vector<1xf32>
      %220 = vector.shape_cast %219 : vector<1xf32> to vector<1x1xf32>
      %221 = arith.subf %220, %208 : vector<1x1xf32>
      %222 = math.absf %221 : vector<1x1xf32>
      %223 = arith.addf %211, %222 : vector<1x1xf32>
      %224 = arith.addf %212, %66 : vector<1x1xf32>
      %c13_i32 = arith.constant 13 : i32
      %225 = vector.broadcast %224 : vector<1x1xf32> to vector<8x128xf32>
      %226 = arith.cmpf olt, %45, %225 : vector<8x128xf32>
      %cst_76 = arith.constant 0.000000e+00 : f32
      %227 = vector.broadcast %cst_76 : f32 to vector<8x128xf32>
      %228 = arith.select %226, %68, %227 : vector<8x128xi1>, vector<8x128xf32>
      %cst_77 = arith.constant dense<0.000000e+00> : vector<8xf32>
      %229 = vector.multi_reduction <add>, %228, %cst_77 [1] : vector<8x128xf32> to vector<8xf32>
      %230 = vector.shape_cast %229 : vector<8xf32> to vector<8x1xf32>
      %cst_78 = arith.constant dense<0.000000e+00> : vector<1xf32>
      %231 = vector.multi_reduction <add>, %230, %cst_78 [0] : vector<8x1xf32> to vector<1xf32>
      %232 = vector.shape_cast %231 : vector<1xf32> to vector<1x1xf32>
      %233 = arith.subf %232, %220 : vector<1x1xf32>
      %234 = math.absf %233 : vector<1x1xf32>
      %235 = arith.addf %223, %234 : vector<1x1xf32>
      %236 = arith.addf %224, %66 : vector<1x1xf32>
      %c14_i32 = arith.constant 14 : i32
      %237 = vector.broadcast %236 : vector<1x1xf32> to vector<8x128xf32>
      %238 = arith.cmpf olt, %45, %237 : vector<8x128xf32>
      %cst_79 = arith.constant 0.000000e+00 : f32
      %239 = vector.broadcast %cst_79 : f32 to vector<8x128xf32>
      %240 = arith.select %238, %68, %239 : vector<8x128xi1>, vector<8x128xf32>
      %cst_80 = arith.constant dense<0.000000e+00> : vector<8xf32>
      %241 = vector.multi_reduction <add>, %240, %cst_80 [1] : vector<8x128xf32> to vector<8xf32>
      %242 = vector.shape_cast %241 : vector<8xf32> to vector<8x1xf32>
      %cst_81 = arith.constant dense<0.000000e+00> : vector<1xf32>
      %243 = vector.multi_reduction <add>, %242, %cst_81 [0] : vector<8x1xf32> to vector<1xf32>
      %244 = vector.shape_cast %243 : vector<1xf32> to vector<1x1xf32>
      %245 = arith.subf %244, %232 : vector<1x1xf32>
      %246 = math.absf %245 : vector<1x1xf32>
      %247 = arith.addf %235, %246 : vector<1x1xf32>
      %248 = arith.addf %236, %66 : vector<1x1xf32>
      %249 = arith.mulf %247, %47 : vector<1x1xf32>
      %cst_82 = arith.constant 1.500000e+01 : f32
      %250 = vector.broadcast %cst_82 : f32 to vector<1x1xf32>
      %251 = arith.mulf %66, %250 : vector<1x1xf32>
      %252 = arith.divf %249, %251 : vector<1x1xf32>
      %253 = vector.broadcast %arg6 : i32 to vector<1x2xi32>
      %254 = arith.cmpi eq, %7, %253 : vector<1x2xi32>
      %cst_83 = arith.constant 0.000000e+00 : f32
      %255 = vector.shape_cast %252 : vector<1x1xf32> to vector<1x1xf32>
      %256 = vector.broadcast %255 : vector<1x1xf32> to vector<1x2xf32>
      %257 = vector.broadcast %cst_83 : f32 to vector<1x2xf32>
      %258 = arith.select %254, %256, %257 : vector<1x2xi1>, vector<1x2xf32>
      %259 = arith.addf %arg7, %258 : vector<1x2xf32>
      scf.yield %259 : vector<1x2xf32>
    }
    %c2_i32_9 = arith.constant 2 : i32
    %12 = vector.shape_cast %11 : vector<1x2xf32> to vector<1x1x2xf32>
    %c0_10 = arith.constant 0 : index
    %c0_11 = arith.constant 0 : index
    %c0_12 = arith.constant 0 : index
    %13 = vector.load %arg5[%c0_10, %c0_11, %c0_12] : memref<1x1x2xf32, #tpu.memory_space<vmem>>, vector<1x1x2xf32>
    tpu.vector_store %arg5[%c0_10, %c0_11, %c0_12], %12 {strides = array<i32>} : memref<1x1x2xf32, #tpu.memory_space<vmem>>, vector<1x1x2xf32>,
    return
  }
  func.func @transform_0(%arg0: i32) -> (i32, i32) {
    %c0_i32 = arith.constant 0 : i32
    %c0_i32_0 = arith.constant 0 : i32
    %c0_i32_1 = arith.constant 0 : i32
    return %c0_i32, %c0_i32_0 : i32, i32
  }
  func.func @transform_1(%arg0: i32) -> (i32, i32) {
    %c0_i32 = arith.constant 0 : i32
    %c0_i32_0 = arith.constant 0 : i32
    %c0_i32_1 = arith.constant 0 : i32
    return %c0_i32, %c0_i32_0 : i32, i32
  }
  func.func @transform_2(%arg0: i32) -> (i32, i32) {
    %c0_i32 = arith.constant 0 : i32
    %c0_i32_0 = arith.constant 0 : i32
    %c0_i32_1 = arith.constant 0 : i32
    return %c0_i32, %c0_i32_0 : i32, i32
  }
  func.func @transform_3(%arg0: i32) -> (i32, i32) {
    %c0_i32 = arith.constant 0 : i32
    %c0_i32_0 = arith.constant 0 : i32
    %c0_i32_1 = arith.constant 0 : i32
    return %c0_i32, %c0_i32_0 : i32, i32
  }
  func.func @transform_4(%arg0: i32) -> (i32, i32, i32) {
    %c0_i32 = arith.constant 0 : i32
    %c0_i32_0 = arith.constant 0 : i32
    %c0_i32_1 = arith.constant 0 : i32
    return %arg0, %c0_i32, %c0_i32_0 : i32, i32, i32
  }
}

</mosaic_0001>

<bundles_post_ra>
// kernel: tpu_custom_call.1
= control target key start
LH: loop header
LB: loop body
LE: loop exit
PB: predicated region body
PF: predicated region fallthrough
CT: control target
= control target key end

     0   :  { %9 = vsyncpa [#allocation3], 0  ;;  %s1395_s0 = inlined_call_operand.hbm [shape: bf16[128,128], index: 0, kind: input, shape index: {}]   ;;  %s1396_s1 = inlined_call_operand.hbm [shape: f32[8,128], index: 1, kind: input, shape index: {}]   ;;  %s1397_s2 = inlined_call_operand.hbm [shape: f32[8,128], index: 2, kind: input, shape index: {}]   ;;  %s1398_s3 = inlined_call_operand.hbm [shape: s32[8,128], index: 3, kind: input, shape index: {}]   ;;  %s1399_s4 = inlined_call_operand.hbm [shape: f32[2,1,2], index: 4, kind: output, shape index: {}]  }
   0x1   :  { %10 = vsyncpa [#allocation6], 0 }
   0x2   :  { %11 = vsyncpa [#allocation9], 0 }
   0x3   :  { %12 = vsyncpa [#allocation4], 0 }
   0x4   :  { %14 = vsyncpa [#allocation4 + $0x1], 0  ;;  %s1107_s15 = smov 0   ;;  %s1109_s16 = smov 0  }
   0x5   :  { %s1111_s17 = smov 0   ;;  %s1113_s18 = smov 0  }
   0x6 LB: > { %s1128_s19 = sadd.s32 4294967295, %s1061_s18   ;;  %s717_s20 = sadd.s32 4294967294, %s1061_s18   ;;  %s1061_s18 = sphi %s1113_s18, %s1422_s18   ;;  %s1057_s17 = sphi %s1111_s17, %s1421_s17   ;;  %s1053_s16 = sphi %s1109_s16, %s1420_s16   ;;  %s1049_s15 = sphi %s1107_s15, %s1419_s15  }
   0x7   : > { %s1132_s21 = sadd.s32 1, %s1061_s18   ;;  %s111_s22 = sadd.s32 1, %s1057_s17 }
   0x8   : > { %s108_s23 = ssub.s32 %s1061_s18, %s1132_s21  ;;  %p121_p0 = scmp.ne.s32.totalorder %s1057_s17, %s1053_s16 }
   0x9   : > { %p109_p1 = scmp.eq.s32.totalorder %s108_s23, 0  ;;  %p122_p2 = scmp.eq.s32.totalorder %s1128_s19, 1 }
   0xa   : > { %p127_p3 = scmp.ne.s32.totalorder %s1053_s16, %s1049_s15  ;;  %p128_p4 = scmp.eq.s32.totalorder %s717_s20, 1 }
   0xb   : > { %s1143_s24 = scalar_select %p109_p1, %s1057_s17, %s111_s22  }
   0xc   : > { %p1145_p5 = por %p122_p2, %p121_p0  ;;  %p1149_p6 = por %p128_p4, %p127_p3 }
   0xd   : > { %p718_p7 = scmp.ge.s32.totalorder %s1061_s18, 1  ;;  %p135_p8 = scmp.lt.s32.totalorder %s1061_s18, 3 }
   0xe   : > { %s1403_s25 = scalar_select %p1145_p5, 1, 0 }
   0xf   : > { %s1404_s26 = scalar_select %p1149_p6, 1, 0 }
  0x10   : > { %p1400_p9 = scmp.eq.s32.totalorder %s1128_s19, 0  ;;  %p1156_p10 = pnand %p718_p7, %p135_p8 }
  0x11   : > { %s1071_s28 = smov [#allocation5]   ;;  %s1072_s30 = smov [#allocation2]  }
  0x12   : > { %s1405_s27 = scalar_select %p1156_p10, 1, 0 }
  0x13   : > { %s161_s29 = sshll.u32 %s1071_s28, 4  ;;  %p790_p11 = pneg %p1156_p10  ;;  %s162_s29 = int_to_ptr.vmem [resolvable:$true] %s161_s29 }
  0x14   : > { %s147_s5 = sshll.u32 %s1072_s30, 4  ;;  %s1073_s7 = smov [#allocation7]   ;;  %s148_s5 = int_to_ptr.vmem [resolvable:$true] %s147_s5 }
  0x15   : > { %p1164_p12 = pnand %p1400_p9, %p790_p11  ;;  %s172_s8 = sshll.u32 %s1073_s7, 4  ;;  %s173_s8 = int_to_ptr.vmem [resolvable:$true] %s172_s8 }
  0x16   : > { %s888_s9 = scalar_lea.vmem %s162_s29, 128  ;;  %p896_p3 = scmp.lt.s32.totalorder %s162_s29, %s162_s29 }
  0x17   : > { %p879_p13 = pneg %p1164_p12  ;;  %p889_p0 = scmp.ne.s32.totalorder %s162_s29, %s888_s9 }
  0x18   : > { %p897_p4 = scmp.lt.s32.totalorder %s888_s9, %s888_s9 }
  0x19   : > { %p891_p1 = pnand %p889_p0, %p879_p13 }
  0x1a   : > { %p898_p7 = por %p897_p4, %p896_p3 }
  0x1b   : > { %p892_p2 = pneg %p891_p1 }
  0x1d   : > { %p899_p8 = pnand %p898_p7, %p892_p2 }
  0x1f   : > { %902 = shalt.err (!%p899_p8)
}
  0x20   : > { %796 = dma.hbm_to_vmem [thread:$0]  (!%p1164_p12), %s1396_s1, 128, %s162_s29, [#allocation6]  }
  0x21   : > { %s914_s12 = scalar_lea.vmem %s148_s5, 1024  ;;  %p922_p0 = scmp.lt.s32.totalorder %s148_s5, %s148_s5 }
  0x22   : > { %p915_p11 = scmp.ne.s32.totalorder %s148_s5, %s914_s12  ;;  %p923_p1 = scmp.lt.s32.totalorder %s914_s12, %s914_s12 }
  0x24   : > { %p917_p9 = pnand %p915_p11, %p879_p13  ;;  %p924_p5 = por %p923_p1, %p922_p0 }
  0x26   : > { %p918_p6 = pneg %p917_p9 }
  0x28   : > { %p925_p10 = pnand %p924_p5, %p918_p6 }
  0x2a   : > { %928 = shalt.err (!%p925_p10)
}
  0x2b   : > { %s1074_s13 = smov 64   ;;  %s1075_s14 = smov 4  }
  0x2c   : > { %793 = dma.hbm_to_vmem [thread:$0]  (!%p1164_p12), %s1395_s0, 1024, %s148_s5, [#allocation3], %s1074_s13, %s1074_s13, %s1075_s14  }
  0x2d   : > { %s940_s23 = scalar_lea.vmem %s173_s8, 128  ;;  %p948_p4 = scmp.lt.s32.totalorder %s173_s8, %s173_s8 }
  0x2e   : > { %p941_p2 = scmp.ne.s32.totalorder %s173_s8, %s940_s23  ;;  %p949_p7 = scmp.lt.s32.totalorder %s940_s23, %s940_s23 }
  0x30   : > { %p943_p9 = pnand %p941_p2, %p879_p13  ;;  %p950_p5 = por %p949_p7, %p948_p4 }
  0x32   : > { %p944_p3 = pneg %p943_p9 }
  0x34   : > { %p951_p6 = pnand %p950_p5, %p944_p3 }
  0x36   : > { %954 = shalt.err (!%p951_p6)
}
  0x37   : > { %799 = dma.hbm_to_vmem [thread:$0]  (!%p1164_p12), %s1397_s2, 128, %s173_s8, [#allocation6]  }
  0x38   : > { %s1076_s30 = smov [#allocation8]  }
  0x39   : > { %s183_s5 = sshll.u32 %s1076_s30, 4  ;;  %s184_s5 = int_to_ptr.vmem [resolvable:$true] %s183_s5 }
  0x3a   : > { %s966_s7 = scalar_lea.vmem %s184_s5, 128  ;;  %p974_p0 = scmp.lt.s32.totalorder %s184_s5, %s184_s5 }
  0x3b   : > { %p967_p10 = scmp.ne.s32.totalorder %s184_s5, %s966_s7  ;;  %p975_p1 = scmp.lt.s32.totalorder %s966_s7, %s966_s7 }
  0x3d   : > { %p969_p8 = pnand %p967_p10, %p879_p13  ;;  %p976_p2 = por %p975_p1, %p974_p0 }
  0x3f   : > { %p970_p11 = pneg %p969_p8 }
  0x41   : > { %p977_p9 = pnand %p976_p2, %p970_p11 }
  0x43   : > { %980 = shalt.err (!%p977_p9)
}
  0x44   : > { %802 = dma.hbm_to_vmem [thread:$0]  (!%p1164_p12), %s1398_s3, 128, %s184_s5, [#allocation9]  }
  0x45   : > { %p1407_p3 = scmp.ne.s32.totalorder %s1405_s27, 0 }
  0x46   : > { %p1408_p4 = scmp.eq.s32.totalorder (!%p1407_p3), %s1128_s19, 0 }
  0x47   : > { %196 = sbr.rel (%p1407_p3) target bundleno = 606 (0x25e), region = 36 }
  0x4c   : > { %1032 = dma.done.wait (%p1408_p4), [#allocation3], 1024   ;;  %p1409_p13 = pmov %p1408_p4 }
  0x4d   : > { %p1410_p7 = pmov %p1408_p4 }
  0x4e   : > { %1034 = vsyncadd (%p1409_p13), [#allocation3], 4294966272 }
  0x4f   : > { %1036 = dma.done.wait (%p1410_p7), [#allocation6], 256   ;;  %p1411_p5 = pmov %p1408_p4 }
  0x50   : > { %p1412_p6 = pmov %p1408_p4 }
  0x51   : > { %1038 = vsyncadd (%p1411_p5), [#allocation6], 4294967040 }
  0x52   : > { %1040 = dma.done.wait (%p1412_p6), [#allocation9], 128   ;;  %p1413_p12 = pmov %p1408_p4 }
  0x53   : > { %s226_s27 = sand.u32 1, %s1053_s16   ;;  %s728_s6 = sshll.u32 %s1128_s19, 1  ;;  %v250_v0 = vlaneseq  ;;  %v1222_v3 = vld [vmem:[#allocation2] sm:$0xf]  ;;  %v1224_v4 = vld [vmem:[#allocation2 + $0x4] sm:$0xf] }
  0x54   : > { %1042 = vsyncadd (%p1413_p12), [#allocation9], 4294967168  ;;  %v1226_v5 = vld [vmem:[#allocation2 + $0x8] sm:$0xf]  ;;  %v1228_v6 = vld [vmem:[#allocation2 + $0xc] sm:$0xf] }
  0x55   : > { %v1218_v1 = vshrl.u32 %v250_v0, 7  ;;  %v1220_v2 = vand.u32 127, %v250_v0  ;;  %v1230_v7 = vld [vmem:[#allocation2 + $0x10] sm:$0xf]  ;;  %v1232_v8 = vld [vmem:[#allocation2 + $0x14] sm:$0xf] }
  0x56   : > { %v1234_v9 = vld [vmem:[#allocation2 + $0x18] sm:$0xf]  ;;  %v1236_v10 = vld [vmem:[#allocation2 + $0x1c] sm:$0xf]  ;;  %v1238_v11 = vld [vmem:[#allocation2 + $0x20] sm:$0xf] }
  0x57   : > { %v1240_v12 = vld [vmem:[#allocation2 + $0x24] sm:$0xf]  ;;  %v1242_v13 = vld [vmem:[#allocation2 + $0x28] sm:$0xf]  ;;  %v1244_v14 = vld [vmem:[#allocation2 + $0x2c] sm:$0xf] }
  0x58   : > { %v1246_v15 = vld [vmem:[#allocation2 + $0x30] sm:$0xf]  ;;  %v1248_v16 = vld [vmem:[#allocation2 + $0x34] sm:$0xf]  ;;  %v1250_v17 = vld [vmem:[#allocation2 + $0x38] sm:$0xf] }
  0x59   : > { %v1252_v18 = vld [vmem:[#allocation2 + $0x3c] sm:$0xf]  ;;  %v1254_v19 = vld [vmem:[#allocation5] sm:$0xff]  ;;  %v1256_v20 = vld [vmem:[#allocation7] sm:$0xff]  ;;  %s1264_s8 = scalar_lea.vmem [#allocation10], %s226_s27  ;;  %v1266_v23 = vmov 0.0  }
  0x5a   : > { %v1258_v21 = vld [vmem:[#allocation8] sm:$0xff]  ;;  %v249_v22 = vsub.f32 %v1254_v19, %v1256_v20  ;;  %s1268_s11 = smov 0  }
  0x5b LB: >> { %v737_v24 = vcombine.low %v1250_v17, %v1252_v18  ;;  %v1077_v25 = vmov 0.0   ;;  %s261_s12 = sadd.s32 %s1069_s11, %s728_s6  ;;  %v736_v26 = vcombine.low %v1246_v15, %v1248_v16  ;;  %vm1078_vm0 = vmmov 0   ;;  %s1069_s11 = sphi %s1268_s11, %s259_s11   ;;  %v1065_v23 = vphi %v1266_v23, %v1416_v23  }
  0x5c   : >> { %752 = vmatprep.subr.bf16.mxu0 %v1077_v25  ;;  %v262_v27 = vstv %s261_s12  ;;  %768 = vmatprep.mubr.msk.bf16.mxu0 %vm1078_vm0, %v1077_v25  ;;  %v735_v30 = vcombine.low %v1242_v13, %v1244_v14  ;;  %v734_v31 = vcombine.low %v1238_v11, %v1240_v12  ;;  %v733_v32 = vcombine.low %v1234_v9, %v1236_v10 }
  0x5d   : >> { %753 = vmatpush3.bf16.msra.mxu0 %v737_v24  ;;  %vm1287_vm1 = vcmp.eq.s32.totalorder %v1258_v21, %v262_v27  ;;  %v732_v33 = vcombine.low %v1230_v7, %v1232_v8  ;;  %v731_v34 = vcombine.low %v1226_v5, %v1228_v6  ;;  %v730_v35 = vcombine.low %v1222_v3, %v1224_v4 }
  0x5e   : >> { %754 = vmatprep.subr.bf16.mxu0 %v1077_v25  ;;  %v729_v29 = vsel %vm1287_vm1, 1.0, %v1077_v25  ;;  %vm738_vm2 = vmpackc.low %vm1287_vm1, %vm1287_vm1  ;;  %v1079_v36 = vmov 0   ;;  %v1080_v37 = vmov 1.0|1.0   ;;  %vm270_vm3 = vcmp.ge.s32.totalorder %v1218_v1, 1 }
  0x5f   : >> { %267 = vadd.xlane.f32.xlu0 %v729_v29  ;;  %vm274_vm4 = vcmp.ge.s32.totalorder %v1218_v1, 2  ;;  %vm278_vm5 = vcmp.ge.s32.totalorder %v1218_v1, 4 }
  0x60   : >> { %874 = vset.pattern.permute.xlu0 %v1079_v36 }
  0x61   : >> { %755 = vmatpush3.bf16.msra.mxu0 %v736_v26 }
  0x62   : >> { %756 = vmatprep.subr.bf16.mxu0 %v1077_v25 }
  0x65   : >> { %757 = vmatpush3.bf16.msra.mxu0 %v735_v30 }
  0x66   : >> { %758 = vmatprep.subr.bf16.mxu0 %v1077_v25 }
  0x69   : >> { %759 = vmatpush3.bf16.msra.mxu0 %v734_v31 }
  0x6a   : >> { %760 = vmatprep.subr.bf16.mxu0 %v1077_v25 }
  0x6d   : >> { %761 = vmatpush3.bf16.msra.mxu0 %v733_v32 }
  0x6e   : >> { %762 = vmatprep.subr.bf16.mxu0 %v1077_v25 }
  0x71   : >> { %763 = vmatpush3.bf16.msra.mxu0 %v732_v33 }
  0x72   : >> { %764 = vmatprep.subr.bf16.mxu0 %v1077_v25 }
  0x75   : >> { %765 = vmatpush3.bf16.msra.mxu0 %v731_v34 }
  0x76   : >> { %766 = vmatprep.subr.bf16.mxu0 %v1077_v25 }
  0x79   : >> { %767 = vmatpush3.bf16.msra.mxu0 %v730_v35 }
  0x7c   : >> { %769 = vmatmul.mubr.msk.bf16.vlgmr.msra.gmra.mxu0 %vm738_vm2, %v1080_v37 }
  0xe8   : >> { %v268_v38 = vpop.xlane.xlu0 %267 }
  0xe9   : >> { %v269_v39 = vrot.slane %v268_v38, 7  ;;  %v375_v49 = vrot.slane %v268_v38, 4 }
  0xeb   : >> { %v271_v40 = vsel %vm270_vm3, %v269_v39, 0.0  ;;  %v376_v50 = vadd.f32 %v375_v49, %v268_v38 }
  0xec   : >> { %v272_v41 = vadd.f32 %v271_v40, %v268_v38  ;;  %v393_v40 = vsel %vm1287_vm1, %v249_v22, 0.0 }
  0xed   : >> { %v377_v51 = vrot.slane %v376_v50, 2 }
  0xee   : >> { %v273_v42 = vrot.slane %v272_v41, 6 }
  0xef   : >> { %v378_v52 = vadd.f32 %v377_v51, %v376_v50 }
  0xf0   : >> { %v275_v43 = vsel %vm274_vm4, %v273_v42, 0.0 }
  0xf1   : >> { %v276_v44 = vadd.f32 %v275_v43, %v272_v41  ;;  %v379_v53 = vrot.slane %v378_v52, 1 }
  0xf3   : >> { %v277_v45 = vrot.slane %v276_v44, 4  ;;  %v1318_v54 = vadd.f32 %v379_v53, %v378_v52 }
  0xf5   : >> { %v279_v46 = vsel %vm278_vm5, %v277_v45, 0.0  ;;  %v382_v55 = vmul.f32 0.06666667, %v1318_v54 }
  0xf6   : >> { %v280_v47 = vadd.f32 %v279_v46, %v276_v44 }
  0xf7   : >> { %v383_v56 = vfloor.f32 %v382_v55 }
  0xf8   : >> { %v281_v48 = vsub.f32 %v280_v47, %v268_v38 }
  0xf9   : >> { %v384_v57 = vadd.f32 1.0, %v383_v56 }
  0xfa   : >> { %284 = vperm.xlu0 %874, %v281_v48  }
  0xfb   : >> { %v385_v58 = vmul.f32 15.0, %v384_v57 }
  0xfd   : >> { %vm386_vm6 = vcmp.le.f32.partialorder %v385_v58, %v1318_v54 }
  0xfe   : >> { %v387_v59 = vsel %vm386_vm6, 1.0, %v1077_v25 }
  0xff   : >> { %v388_v60 = vadd.f32 %v387_v59, %v383_v56 }
 0x101   : >> { %v389_v62 = vmul.f32 15.0, %v388_v60 }
 0x103   : >> { %vm390_vm7 = vcmp.gt.f32.partialorder %v389_v62, %v1318_v54 }
 0x104   : >> { %v391_v26 = vsel %vm390_vm7, 1.0, %v1077_v25 }
 0x105   : >> { %v1325_v27 = vsub.f32 %v388_v60, %v391_v26 }
 0x107   : >> { %v406_v29 = vadd.f32 %v1325_v27, %v1325_v27 }
 0x109   : >> { %v420_v30 = vadd.f32 %v406_v29, %v1325_v27 }
 0x10b   : >> { %v434_v31 = vadd.f32 %v420_v30, %v1325_v27 }
 0x10d   : >> { %v448_v32 = vadd.f32 %v434_v31, %v1325_v27 }
 0x10f   : >> { %v462_v33 = vadd.f32 %v448_v32, %v1325_v27 }
 0x111   : >> { %v476_v34 = vadd.f32 %v462_v33, %v1325_v27 }
 0x113   : >> { %v490_v35 = vadd.f32 %v476_v34, %v1325_v27 }
 0x115   : >> { %v504_v36 = vadd.f32 %v490_v35, %v1325_v27 }
 0x117   : >> { %v518_v25 = vadd.f32 %v504_v36, %v1325_v27 }
 0x119   : >> { %v532_v37 = vadd.f32 %v518_v25, %v1325_v27 }
 0x11b   : >> { %v546_v38 = vadd.f32 %v532_v37, %v1325_v27 }
 0x11d   : >> { %v560_v42 = vadd.f32 %v546_v38, %v1325_v27 }
 0x11f   : >> { %v574_v55 = vadd.f32 %v560_v42, %v1325_v27 }
 0x121   : >> { %v588_v57 = vadd.f32 %v574_v55, %v1325_v27 }
 0x13c   : >> { %v369_v61 = vpop.f32.mrf.mxu0 }
 0x13e   : >> { %v770_v63 = vpop.f32.mrf.mxu0 }
 0x140   : >> { %v372_v0 = vpop.f32.mrf.mxu0 }
 0x142   : >> { %v771_v24 = vpop.f32.mrf.mxu0 }
 0x175   : >> { %v285_v39 = vpop.permute.xlu0 %284 }
 0x176   : >> { %v370_v41 = vadd.f32 %v369_v61, %v285_v39 }
 0x178   : >> { %vm561_vm8 = vcmp.lt.f32.partialorder %v370_v41, %v560_v42  ;;  %vm394_vm9 = vcmp.lt.f32.partialorder %v370_v41, %v1325_v27  ;;  %vm407_vm10 = vcmp.lt.f32.partialorder %v370_v41, %v406_v29  ;;  %vm421_vm11 = vcmp.lt.f32.partialorder %v370_v41, %v420_v30 }
 0x179   : >> { %v562_v43 = vsel %vm561_vm8, %v393_v40, 0.0  ;;  %v395_v44 = vsel %vm394_vm9, %v393_v40, 0.0  ;;  %v408_v45 = vsel %vm407_vm10, %v393_v40, 0.0  ;;  %v422_v46 = vsel %vm421_vm11, %v393_v40, 0.0 }
 0x17a   : >> { %563 = vadd.xlane.f32.xlu0 %v562_v43  ;;  %396 = vadd.xlane.f32.xlu1 %v395_v44  ;;  %vm435_vm12 = vcmp.lt.f32.partialorder %v370_v41, %v434_v31  ;;  %vm449_vm13 = vcmp.lt.f32.partialorder %v370_v41, %v448_v32  ;;  %vm463_vm14 = vcmp.lt.f32.partialorder %v370_v41, %v462_v33 }
 0x17b   : >> { %v436_v47 = vsel %vm435_vm12, %v393_v40, 0.0  ;;  %v450_v28 = vsel %vm449_vm13, %v393_v40, 0.0  ;;  %v464_v48 = vsel %vm463_vm14, %v393_v40, 0.0  ;;  %vm477_vm15 = vcmp.lt.f32.partialorder %v370_v41, %v476_v34 }
 0x17c   : >> { %v478_v49 = vsel %vm477_vm15, %v393_v40, 0.0  ;;  %vm491_vm0 = vcmp.lt.f32.partialorder %v370_v41, %v490_v35  ;;  %vm505_vm1 = vcmp.lt.f32.partialorder %v370_v41, %v504_v36  ;;  %vm519_vm2 = vcmp.lt.f32.partialorder %v370_v41, %v518_v25 }
 0x17d   : >> { %v492_v50 = vsel %vm491_vm0, %v393_v40, 0.0  ;;  %v506_v51 = vsel %vm505_vm1, %v393_v40, 0.0  ;;  %v520_v52 = vsel %vm519_vm2, %v393_v40, 0.0  ;;  %vm533_vm3 = vcmp.lt.f32.partialorder %v370_v41, %v532_v37 }
 0x17e   : >> { %409 = vadd.xlane.f32.xlu1 %v408_v45  ;;  %v534_v53 = vsel %vm533_vm3, %v393_v40, 0.0  ;;  %vm547_vm4 = vcmp.lt.f32.partialorder %v370_v41, %v546_v38  ;;  %vm575_vm5 = vcmp.lt.f32.partialorder %v370_v41, %v574_v55  ;;  %vm589_vm6 = vcmp.lt.f32.partialorder %v370_v41, %v588_v57 }
 0x17f   : >> { %v548_v56 = vsel %vm547_vm4, %v393_v40, 0.0  ;;  %v576_v58 = vsel %vm575_vm5, %v393_v40, 0.0  ;;  %v590_v59 = vsel %vm589_vm6, %v393_v40, 0.0 }
 0x182   : >> { %423 = vadd.xlane.f32.xlu1 %v422_v46 }
 0x186   : >> { %437 = vadd.xlane.f32.xlu1 %v436_v47 }
 0x18a   : >> { %451 = vadd.xlane.f32.xlu1 %v450_v28 }
 0x18e   : >> { %465 = vadd.xlane.f32.xlu1 %v464_v48 }
 0x192   : >> { %479 = vadd.xlane.f32.xlu1 %v478_v49 }
 0x196   : >> { %493 = vadd.xlane.f32.xlu1 %v492_v50 }
 0x19a   : >> { %507 = vadd.xlane.f32.xlu1 %v506_v51 }
 0x19e   : >> { %521 = vadd.xlane.f32.xlu1 %v520_v52 }
 0x1a2   : >> { %535 = vadd.xlane.f32.xlu1 %v534_v53 }
 0x1a6   : >> { %549 = vadd.xlane.f32.xlu1 %v548_v56 }
 0x1aa   : >> { %577 = vadd.xlane.f32.xlu1 %v576_v58 }
 0x1ae   : >> { %591 = vadd.xlane.f32.xlu1 %v590_v59 }
 0x203   : >> { %v397_v60 = vpop.xlane.xlu1 %396 }
 0x204   : >> { %v398_v0 = vrot.slane %v397_v60, 4 }
 0x206   : >> { %v399_v31 = vadd.f32 %v398_v0, %v397_v60 }
 0x207   : >> { %v410_v61 = vpop.xlane.xlu1 %409 }
 0x208   : >> { %v411_v62 = vrot.slane %v410_v61, 4  ;;  %v400_v25 = vrot.slane %v399_v31, 2 }
 0x20a   : >> { %v412_v26 = vadd.f32 %v411_v62, %v410_v61  ;;  %v401_v42 = vadd.f32 %v400_v25, %v399_v31 }
 0x20b   : >> { %v424_v63 = vpop.xlane.xlu1 %423 }
 0x20c   : >> { %v425_v24 = vrot.slane %v424_v63, 4  ;;  %v413_v33 = vrot.slane %v412_v26, 2  ;;  %v402_v50 = vrot.slane %v401_v42, 1 }
 0x20e   : >> { %v426_v32 = vadd.f32 %v425_v24, %v424_v63  ;;  %v414_v39 = vadd.f32 %v413_v33, %v412_v26  ;;  %v403_v62 = vadd.f32 %v402_v50, %v401_v42 }
 0x20f   : >> { %v438_v29 = vpop.xlane.xlu1 %437 }
 0x210   : >> { %v439_v30 = vrot.slane %v438_v29, 4  ;;  %v427_v37 = vrot.slane %v426_v32, 2  ;;  %v415_v46 = vrot.slane %v414_v39, 1 }
 0x212   : >> { %v440_v34 = vadd.f32 %v439_v30, %v438_v29  ;;  %v428_v43 = vadd.f32 %v427_v37, %v426_v32  ;;  %v416_v56 = vadd.f32 %v415_v46, %v414_v39  ;;  %v564_v29 = vpop.xlane.xlu0 %563 }
 0x213   : >> { %v452_v35 = vpop.xlane.xlu1 %451 }
 0x214   : >> { %v453_v36 = vrot.slane %v452_v35, 4  ;;  %v441_v40 = vrot.slane %v440_v34, 2  ;;  %v429_v51 = vrot.slane %v428_v43, 1  ;;  %v417_v30 = vsub.f32 %v416_v56, %v403_v62 }
 0x216   : >> { %v454_v38 = vadd.f32 %v453_v36, %v452_v35  ;;  %v442_v47 = vadd.f32 %v441_v40, %v440_v34  ;;  %v430_v63 = vadd.f32 %v429_v51, %v428_v43 }
 0x217   : >> { %v466_v41 = vpop.xlane.xlu1 %465 }
 0x218   : >> { %v455_v44 = vrot.slane %v454_v38, 2  ;;  %v467_v45 = vrot.slane %v466_v41, 4  ;;  %v443_v57 = vrot.slane %v442_v47, 1  ;;  %v431_v36 = vsub.f32 %v430_v63, %v416_v56 }
 0x21a   : >> { %v468_v28 = vadd.f32 %v467_v45, %v466_v41  ;;  %v456_v52 = vadd.f32 %v455_v44, %v454_v38  ;;  %v444_v31 = vadd.f32 %v443_v57, %v442_v47  ;;  %v565_v38 = vrot.slane %v564_v29, 4 }
 0x21b   : >> { %v480_v48 = vpop.xlane.xlu1 %479  ;;  %v418_v41 = vand.u32 2147483647, %v417_v30 }
 0x21c   : >> { %v481_v49 = vrot.slane %v480_v48, 4  ;;  %v469_v53 = vrot.slane %v468_v28, 2  ;;  %v457_v0 = vrot.slane %v456_v52, 1  ;;  %v445_v44 = vsub.f32 %v444_v31, %v430_v63 }
 0x21d   : >> { %v566_v51 = vadd.f32 %v565_v38, %v564_v29 }
 0x21e   : >> { %v482_v55 = vadd.f32 %v481_v49, %v480_v48  ;;  %v470_v58 = vadd.f32 %v469_v53, %v468_v28  ;;  %v458_v25 = vadd.f32 %v457_v0, %v456_v52  ;;  %v404_v48 = vand.u32 2147483647, %v403_v62 }
 0x21f   : >> { %v494_v59 = vpop.xlane.xlu1 %493  ;;  %v432_v49 = vand.u32 2147483647, %v431_v36  ;;  %v446_v52 = vand.u32 2147483647, %v445_v44 }
 0x220   : >> { %v483_v60 = vrot.slane %v482_v55, 2  ;;  %v495_v61 = vrot.slane %v494_v59, 4  ;;  %v471_v32 = vrot.slane %v470_v58, 1  ;;  %v459_v47 = vsub.f32 %v458_v25, %v444_v31 }
 0x221   : >> { %v419_v56 = vadd.f32 %v418_v41, %v404_v48 }
 0x222   : >> { %v484_v24 = vadd.f32 %v483_v60, %v482_v55  ;;  %v496_v26 = vadd.f32 %v495_v61, %v494_v59  ;;  %v472_v42 = vadd.f32 %v471_v32, %v470_v58  ;;  %v460_v58 = vand.u32 2147483647, %v459_v47 }
 0x223   : >> { %v508_v33 = vpop.xlane.xlu1 %507  ;;  %v433_v63 = vadd.f32 %v432_v49, %v419_v56  ;;  %v567_v32 = vrot.slane %v566_v51, 2 }
 0x224   : >> { %v497_v34 = vrot.slane %v496_v26, 2  ;;  %v509_v35 = vrot.slane %v508_v33, 4  ;;  %v485_v37 = vrot.slane %v484_v24, 1  ;;  %v473_v57 = vsub.f32 %v472_v42, %v458_v25 }
 0x225   : >> { %v568_v41 = vadd.f32 %v567_v32, %v566_v51  ;;  %v603_v32 = vmul.f32 15.0, %v1325_v27 }
 0x226   : >> { %v498_v39 = vadd.f32 %v497_v34, %v496_v26  ;;  %v510_v40 = vadd.f32 %v509_v35, %v508_v33  ;;  %v486_v50 = vadd.f32 %v485_v37, %v484_v24  ;;  %v447_v34 = vadd.f32 %v446_v52, %v433_v63 }
 0x227   : >> { %v522_v43 = vpop.xlane.xlu1 %521  ;;  %v474_v31 = vand.u32 2147483647, %v473_v57  ;;  %v569_v56 = vrot.slane %v568_v41, 1  ;;  %875 = vrcp.f32 %v603_v32 }
 0x228   : >> { %v499_v45 = vrot.slane %v498_v39, 1  ;;  %v511_v46 = vrot.slane %v510_v40, 2  ;;  %v523_v28 = vrot.slane %v522_v43, 4  ;;  %v487_v26 = vsub.f32 %v486_v50, %v472_v42 }
 0x229   : >> { %v461_v38 = vadd.f32 %v460_v58, %v447_v34 }
 0x22a   : >> { %v512_v53 = vadd.f32 %v511_v46, %v510_v40  ;;  %v524_v55 = vadd.f32 %v523_v28, %v522_v43  ;;  %v500_v59 = vadd.f32 %v499_v45, %v498_v39  ;;  %v488_v25 = vand.u32 2147483647, %v487_v26 }
 0x22b   : >> { %v536_v60 = vpop.xlane.xlu1 %535  ;;  %v475_v45 = vadd.f32 %v474_v31, %v461_v38 }
 0x22c   : >> { %v513_v61 = vrot.slane %v512_v53, 1  ;;  %v525_v0 = vrot.slane %v524_v55, 2  ;;  %v537_v30 = vrot.slane %v536_v60, 4  ;;  %v501_v24 = vsub.f32 %v500_v59, %v486_v50 }
 0x22e   : >> { %v514_v33 = vadd.f32 %v513_v61, %v512_v53  ;;  %v526_v62 = vadd.f32 %v525_v0, %v524_v55  ;;  %v538_v29 = vadd.f32 %v537_v30, %v536_v60  ;;  %v502_v42 = vand.u32 2147483647, %v501_v24 }
 0x22f   : >> { %v550_v35 = vpop.xlane.xlu1 %549  ;;  %v489_v53 = vadd.f32 %v488_v25, %v475_v45 }
 0x230   : >> { %v527_v36 = vrot.slane %v526_v62, 1  ;;  %v551_v37 = vrot.slane %v550_v35, 4  ;;  %v515_v39 = vsub.f32 %v514_v33, %v500_v59  ;;  %v539_v40 = vrot.slane %v538_v29, 2 }
 0x231   : >> { %v503_v60 = vadd.f32 %v502_v42, %v489_v53  ;;  %v606_v53 = vstv %s1069_s11  ;;  %s259_s11 = sadd.s32 1, %s1069_s11  }
 0x232   : >> { %v528_v44 = vadd.f32 %v527_v36, %v526_v62  ;;  %v552_v43 = vadd.f32 %v551_v37, %v550_v35  ;;  %v540_v46 = vadd.f32 %v539_v40, %v538_v29  ;;  %v516_v50 = vand.u32 2147483647, %v515_v39  ;;  %p256_p10 = scmp.ge.s32.totalorder %s259_s11, 2  }
 0x233   : >> { %v578_v28 = vpop.xlane.xlu1 %577  ;;  %vm607_vm7 = vcmp.eq.s32.totalorder %v1220_v2, %v606_v53  ;;  %vm610_vm8 = vcmask (%p256_p10), 8192   ;;  %s740_s13 = sshll.u32 (%p256_p10), %s1128_s19, 4  ;;  %s625_s23 = sshll.u32 (%p256_p10), %s1264_s8, 4  ;;  %s626_s23 = int_to_ptr.vmem [resolvable:$true] %s625_s23 }
 0x234   : >> { %v529_v48 = vsub.f32 %v528_v44, %v514_v33  ;;  %v553_v49 = vrot.slane %v552_v43, 2  ;;  %v579_v47 = vrot.slane %v578_v28, 4  ;;  %v541_v55 = vrot.slane %v540_v46, 1  ;;  %s623_s22 = scalar_lea.hbm (%p256_p10), %s1399_s4, %s740_s13  ;;  %s613_s28 = scalar_lea.sflag (%p256_p10), [#allocation4], %s226_s27 }
 0x235   : >> { %v517_v26 = vadd.f32 %v516_v50, %v503_v60  ;;  %v570_v33 = vadd.f32 %v569_v56, %v568_v41  ;;  %s981_s29 = scalar_lea.vmem (%p256_p10), %s626_s23, 16  ;;  %p1417_p11 = scmp.ne.s32.totalorder (%p256_p10), %s1403_s25, 0 }
 0x236   : >> { %v554_v52 = vadd.f32 %v553_v49, %v552_v43  ;;  %v580_v57 = vadd.f32 %v579_v47, %v578_v28  ;;  %v530_v61 = vand.u32 2147483647, %v529_v48  ;;  %v542_v59 = vadd.f32 %v541_v55, %v540_v46  ;;  %v876_v55 = vpop.eup %875  ;;  %p982_p8 = scmp.ne.s32.totalorder (%p256_p10), %s626_s23, %s981_s29  ;;  %s1081_s30 = smov (%p256_p10), [#allocation10]  }
 0x237   : >> { %v592_v0 = vpop.xlane.xlu1 %591  ;;  %s985_s5 = sshll.u32 (%p256_p10), %s1081_s30, 4  ;;  %s986_s5 = int_to_ptr.vmem [resolvable:$false] %s985_s5 }
 0x238   : >> { %v555_v51 = vrot.slane %v554_v52, 1  ;;  %v581_v63 = vrot.slane %v580_v57, 2  ;;  %v593_v58 = vrot.slane %v592_v0, 4  ;;  %v543_v30 = vsub.f32 %v542_v59, %v528_v44  ;;  %p983_p0 = pnand (%p256_p10), %p982_p8, %p1417_p11  ;;  %s987_s7 = scalar_lea.vmem (%p256_p10), %s986_s5, 32 }
 0x239   : >> { %v531_v24 = vadd.f32 %v530_v61, %v517_v26  ;;  %p988_p2 = scmp.lt.s32.totalorder (%p256_p10), %s626_s23, %s986_s5  ;;  %p989_p9 = scmp.lt.s32.totalorder (%p256_p10), %s987_s7, %s981_s29 }
 0x23a   : >> { %v556_v62 = vadd.f32 %v555_v51, %v554_v52  ;;  %v582_v34 = vadd.f32 %v581_v63, %v580_v57  ;;  %v594_v31 = vadd.f32 %v593_v58, %v592_v0  ;;  %v544_v29 = vand.u32 2147483647, %v543_v30  ;;  %p984_p1 = pneg (%p256_p10), %p983_p0 }
 0x23b   : > { %p990_p3 = por (%p256_p10), %p989_p9, %p988_p2 }
 0x23c   : >> { %v557_v35 = vsub.f32 %v556_v62, %v542_v59  ;;  %v571_v36 = vsub.f32 %v570_v33, %v556_v62  ;;  %v583_v37 = vrot.slane %v582_v34, 1  ;;  %v595_v38 = vrot.slane %v594_v31, 2 }
 0x23d   : >> { %v545_v25 = vadd.f32 %v544_v29, %v531_v24  ;;  %p991_p4 = pnand (%p256_p10), %p990_p3, %p984_p1 }
 0x23e   : >> { %v558_v39 = vand.u32 2147483647, %v557_v35  ;;  %v584_v40 = vadd.f32 %v583_v37, %v582_v34  ;;  %v596_v43 = vadd.f32 %v595_v38, %v594_v31  ;;  %v572_v44 = vand.u32 2147483647, %v571_v36 }
 0x240   : >> { %v559_v45 = vadd.f32 %v558_v39, %v545_v25  ;;  %v585_v42 = vsub.f32 %v584_v40, %v570_v33  ;;  %v597_v27 = vrot.slane %v596_v43, 1 }
 0x242   : >> { %v573_v41 = vadd.f32 %v572_v44, %v559_v45  ;;  %v586_v46 = vand.u32 2147483647, %v585_v42  ;;  %v598_v28 = vadd.f32 %v597_v27, %v596_v43 }
 0x244   : >> { %v599_v48 = vsub.f32 %v598_v28, %v584_v40  ;;  %v587_v49 = vadd.f32 %v586_v46, %v573_v41 }
 0x246   : >> { %v600_v47 = vand.u32 2147483647, %v599_v48 }
 0x248   : >> { %v601_v50 = vadd.f32 %v600_v47, %v587_v49 }
 0x24a   : >> { %v602_v56 = vmul.f32 %v601_v50, %v1318_v54 }
 0x24c   : >> { %v605_v52 = vmul.f32 %v876_v55, %v602_v56 }
 0x24d   : > { %258 = sbr.rel (!%p256_p10) target bundleno = 91 (0x5b), region = 92 }
 0x24e   : >> { %v608_v57 = vsel %vm607_vm7, %v605_v52, 0.0 }
 0x24f   : >> { %v609_v60 = vadd.f32 %v1065_v23, %v608_v57  }
 0x251   : >> { %v1416_v23 = vmov %v609_v60  ;;  %611 = vst.msk [vmem:[%s1264_s8] sm:$0x1] (%p256_p10), %vm610_vm8, %v609_v60 }
 0x252   : > { %994 = shalt.err (!%p991_p4)
}
 0x253   : > { %s995_s19 = scalar_lea.hbm %s623_s22, 16  ;;  %s999_s27 = scalar_lea.hbm %s1399_s4, 32 }
 0x254   : > { %p996_p13 = scmp.ne.s32.totalorder %s623_s22, %s995_s19  ;;  %p1000_p6 = scmp.lt.s32.totalorder %s623_s22, %s1399_s4 }
 0x255   : > { %p1001_p12 = scmp.lt.s32.totalorder %s999_s27, %s995_s19 }
 0x256   : > { %p997_p7 = pnand %p996_p13, %p1417_p11 }
 0x257   : > { %p1002_p10 = por %p1001_p12, %p1000_p6 }
 0x258   : > { %p998_p5 = pneg %p997_p7 }
 0x25a   : > { %p1003_p8 = pnand %p1002_p10, %p998_p5 }
 0x25c   : > { %1006 = shalt.err (!%p1003_p8)
}
 0x25d   : > { %788 = dma.vmem_to_hbm [thread:$0]  (%p1417_p11), %s626_s23, 16, %s623_s22, %s613_s28  }
 0x25e PF: > { %p815_p0 = scmp.ge.s32.totalorder %s1061_s18, 2  ;;  %s637_s11 = sand.u32 1, %s1049_s15  }
 0x25f   : > { %p1418_p1 = scmp.ne.s32.totalorder %s1404_s26, 0  ;;  %s638_s12 = scalar_lea.sflag [#allocation4], %s637_s11 }
 0x261   : > { %p804_p2 = pnand %p815_p0, %p1418_p1 }
 0x263   : > { %p805_p9 = pneg %p804_p2 }
 0x265   : > { %1044 = dma.done.wait (%p805_p9), %s638_s12, 16  }
 0x266   : > { %1046 = vsyncadd (%p805_p9), %s638_s12, 4294967280  ;;  %p17_p3 = scmp.ge.s32.totalorder %s1132_s21, 4   ;;  %s1419_s15 = smov %s1053_s16 }
 0x267   : > { %s1420_s16 = smov %s1057_s17  ;;  %s1421_s17 = smov %s1143_s24 }
 0x268   : > { %s1422_s18 = smov %s1132_s21  ;;  %19 = sbr.rel (!%p17_p3) target bundleno = 6 (0x6), region = 103 }
 0x26d   :  { %642 = vsyncpa [#allocation3], 1 }
 0x26e   :  { %644 = vsyncpa [#allocation3 + $0x1], 1 }
 0x26f   :  { %645 = vsyncpa [#allocation6], 1 }
 0x270   :  { %646 = vsyncpa [#allocation9], 1 }
 0x271   :  { %647 = vsyncpa [#allocation4], 1 }
 0x272   :  { %649 = vsyncpa [#allocation4 + $0x1], 1 }

</bundles_post_ra>
